<compile_context>
chip_gen: v5e
topology: v5e:2x2
jax: 0.10.0
libtpu: 0.0.40
codegen_flags: <defaults>
</compile_context>

<pallas_src>
import jax
import jax.numpy as jnp
import numpy as np
from jax.experimental import pallas as pl
from jax.experimental.pallas import tpu as pltpu


def multiattention_kernel(seq_ref, tgt_ref, mem_ref,
                          wkv_ref, wq_ref, w1_ref, tail_ref,
                          out_ref, att_ref):
    seq = seq_ref[...]                      # (TB, L, D) f32
    TB, L, D = seq.shape
    tgt = tgt_ref[...]                      # (TB, D)
    mem = mem_ref[...]                      # (TB, D)

    # ---- fused keys/values projection: one (TB*L, D) @ (D, 2D) MXU pass ----
    ev = jnp.dot(seq.reshape(TB * L, D), wkv_ref[...],
                 preferred_element_type=jnp.float32)                   # (TB*L, 2D)
    e = ev[:, :D].reshape(TB, L, D)         # keys projection
    V = ev[:, D:].reshape(TB, L, D)         # values projection
    v = jnp.dot(tgt, wq_ref[...], preferred_element_type=jnp.float32)  # (TB, D)

    # e_mask = np.where(e_, 1, 0): 1 where the keys projection is nonzero.
    mask = (e != 0.0).astype(jnp.float32)

    vb = v[:, None, :]                      # (TB, 1, D) broadcast over L
    mb = mem[:, None, :]
    # (x - e) * mask == x*mask - e   and   (x * e) * mask == x * e
    # (exact for finite inputs, since e*mask == e).
    vm = vb * mask
    mm = mb * mask
    alpha = jnp.concatenate([vm - e, vb * e, mm - e, mb * e], axis=-1)  # (TB, L, 4D)

    # ---- fully_connected layer 1: single (TB*L, 4D) @ (4D, 8) MXU pass ----
    tail = tail_ref[...]                    # (3, 8): row0 = b1, row1 = w2^T, row2[0] = b2
    h = jax.nn.sigmoid(
        jnp.dot(alpha.reshape(TB * L, 4 * D), w1_ref[...],
                preferred_element_type=jnp.float32) + tail[0:1, :])     # (TB*L, 8)

    # ---- fully_connected layer 2 (8 -> 1) on the VPU/XLU (skip the N=1 matmul) ----
    att = jax.nn.sigmoid(
        jnp.sum(h * tail[1:2, :], axis=-1, keepdims=True) + tail[2:3, 0:1])  # (TB*L, 1)

    att3 = att.reshape(TB, L, 1)
    att_ref[...] = att3[:, :, 0]            # lane-dense (TB, L) store

    # output[b, :] = sum_l att[b, l] * V[b, l, :]
    out_ref[...] = jnp.sum(att3 * V, axis=1)                            # (TB, D)


def multiattention_forward(seq, tgt, mem, wk, wq, wv, w1, b1, w2, b2,
                           *, batch_tile=None):
    B, L, D = seq.shape
    if batch_tile is None:
        # Leading-dim block: either the full batch (small B) or a multiple of 8.
        batch_tile = B if B <= 8 else 8
    TB = int(batch_tile)

    # Fuse keys + values weights into one (D, 2D) matrix.
    wkv = jnp.concatenate([wk, wv], axis=1).astype(jnp.float32)

    # Pack the tiny MLP-tail parameters into a single (3, 8) buffer.
    tail = jnp.zeros((3, 8), jnp.float32)
    tail = tail.at[0, :].set(b1.reshape(-1).astype(jnp.float32))        # b1 (8,)
    tail = tail.at[1, :].set(w2.reshape(-1).astype(jnp.float32))        # w2 (8,)
    tail = tail.at[2, 0].set(b2.reshape(-1)[0].astype(jnp.float32))     # b2 scalar

    grid = (pl.cdiv(B, TB),)

    # Advisory cost estimate for XLA's scheduler.
    flops = (2 * B * L * D * (2 * D)        # fused k/v projection
             + 2 * B * D * D                # query projection
             + 2 * B * L * (4 * D) * 8      # MLP layer 1
             + 2 * B * L * 8                # MLP layer 2
             + 2 * B * L * D)               # attention-weighted reduction
    transcendentals = B * L * 9             # 8 + 1 sigmoids per row
    bytes_accessed = 4 * (B * L * D + 2 * B * D + 2 * D * D + D * D
                          + 4 * D * 8 + 24 + B * D + B * L)

    # Per-step VMEM budget (double-buffered blocked operands + resident weights +
    # generous temporary headroom), clamped to a v7x-safe scoped limit.
    block_bytes = 4 * (TB * L * D + 2 * TB * D + TB * D + TB * L)
    weight_bytes = 4 * (2 * D * D + D * D + 4 * D * 8 + 24)
    temp_bytes = 4 * TB * L * (8 * D + 32)
    vmem_limit = int(min(32 * 1024 * 1024,
                         max(16 * 1024 * 1024,
                             2 * block_bytes + weight_bytes + temp_bytes)))

    out2d, att2d = pl.pallas_call(
        multiattention_kernel,
        out_shape=(jax.ShapeDtypeStruct((B, D), jnp.float32),    # self.output
                   jax.ShapeDtypeStruct((B, L), jnp.float32)),   # self.att_vect (squeezed)
        grid=grid,
        in_specs=[
            pl.BlockSpec((TB, L, D), lambda i: (i, 0, 0)),       # seq_items
            pl.BlockSpec((TB, D), lambda i: (i, 0)),             # target_items
            pl.BlockSpec((TB, D), lambda i: (i, 0)),             # memory
            pl.BlockSpec((D, 2 * D), lambda i: (0, 0)),          # wkv (resident)
            pl.BlockSpec((D, D), lambda i: (0, 0)),              # wq  (resident)
            pl.BlockSpec((4 * D, 8), lambda i: (0, 0)),          # w1  (resident)
            pl.BlockSpec((3, 8), lambda i: (0, 0)),              # packed b1/w2/b2
        ],
        out_specs=(pl.BlockSpec((TB, D), lambda i: (i, 0)),
                   pl.BlockSpec((TB, L), lambda i: (i, 0))),
        compiler_params=pltpu.CompilerParams(
            dimension_semantics=("parallel",),
            vmem_limit_bytes=vmem_limit),
        cost_estimate=pl.CostEstimate(flops=flops,
                                      transcendentals=transcendentals,
                                      bytes_accessed=bytes_accessed),
    )(seq, tgt, mem, wkv, wq, w1, tail)

    return out2d, att2d.reshape(B, L, 1)


def reference_forward(seq, tgt, mem, wk, wq, wv, w1, b1, w2, b2):
    # Pure-JAX mirror of the PyTorch forward (heads == 1).
    e = seq @ wk
    V = seq @ wv
    v = tgt @ wq
    mask = (e != 0.0).astype(jnp.float32)
    vb, mb = v[:, None, :], mem[:, None, :]
    alpha = jnp.concatenate(
        [(vb - e) * mask, (vb * e) * mask, (mb - e) * mask, (mb * e) * mask], axis=-1)
    h = jax.nn.sigmoid(alpha @ w1 + b1[0])
    att = jax.nn.sigmoid(h @ w2 + b2[0])
    out = jnp.einsum('blq,bld->bd', att, V)   # q == 1
    return out, att


if __name__ == "__main__":
    B, L, D = 2, 8, 32     # batch, sequence length, embed_dim (heads = 1)
    key = jax.random.PRNGKey(0)
    ks = jax.random.split(key, 10)

    seq = jax.random.normal(ks[0], (B, L, D), jnp.float32)   # seq_items
    tgt = jax.random.normal(ks[1], (B, D), jnp.float32)      # target_items
    mem = jax.random.normal(ks[2], (B, D), jnp.float32)      # memory

    # Deterministic synthetic parameters (Linear weights stored as (in, out)).
    wk = jax.random.normal(ks[3], (D, D), jnp.float32) * 0.1
    wq = jax.random.normal(ks[4], (D, D), jnp.float32) * 0.1
    wv = jax.random.normal(ks[5], (D, D), jnp.float32) * 0.1
    w1 = jax.random.normal(ks[6], (4 * D, 8), jnp.float32) * 0.1
    b1 = jax.random.normal(ks[7], (1, 8), jnp.float32) * 0.1
    w2 = jax.random.normal(ks[8], (8, 1), jnp.float32) * 0.1
    b2 = jax.random.normal(ks[9], (1, 1), jnp.float32) * 0.1

    out, att = jax.jit(multiattention_forward)(seq, tgt, mem, wk, wq, wv, w1, b1, w2, b2)
    jax.block_until_ready((out, att))

    out_ref, att_ref = reference_forward(seq, tgt, mem, wk, wq, wv, w1, b1, w2, b2)
    np.testing.assert_allclose(np.asarray(out), np.asarray(out_ref), rtol=1e-5, atol=1e-5)
    np.testing.assert_allclose(np.asarray(att), np.asarray(att_ref), rtol=1e-5, atol=1e-5)

    print("KERNEL_OK")
</pallas_src>

<mosaic_0001>
module attributes {stable_mosaic.version = 11 : i64} {
  func.func @multiattention_kernel(%arg0: i32, %arg1: memref<2x8x32xf32, #tpu.memory_space<vmem>>, %arg2: memref<2x32xf32, #tpu.memory_space<vmem>>, %arg3: memref<2x32xf32, #tpu.memory_space<vmem>>, %arg4: memref<32x64xf32, #tpu.memory_space<vmem>>, %arg5: memref<32x32xf32, #tpu.memory_space<vmem>>, %arg6: memref<128x8xf32, #tpu.memory_space<vmem>>, %arg7: memref<3x8xf32, #tpu.memory_space<vmem>>, %arg8: memref<2x32xf32, #tpu.memory_space<vmem>>, %arg9: memref<2x8xf32, #tpu.memory_space<vmem>>) attributes {dimension_semantics = [#tpu.dimension_semantics<parallel>], iteration_bounds = array<i64: 1>, scalar_prefetch = 0 : i64, scratch_operands = 0 : i64, tpu.core_type = #tpu.core_type<tc>, window_params = [{transform_indices = @transform_0, window_bounds = array<i64: 2, 8, 32>}, {transform_indices = @transform_1, window_bounds = array<i64: 2, 32>}, {transform_indices = @transform_2, window_bounds = array<i64: 2, 32>}, {pipeline_mode = #tpu.pipeline_mode<synchronous>, transform_indices = @transform_3, window_bounds = array<i64: 32, 64>}, {pipeline_mode = #tpu.pipeline_mode<synchronous>, transform_indices = @transform_4, window_bounds = array<i64: 32, 32>}, {pipeline_mode = #tpu.pipeline_mode<synchronous>, transform_indices = @transform_5, window_bounds = array<i64: 128, 8>}, {pipeline_mode = #tpu.pipeline_mode<synchronous>, transform_indices = @transform_6, window_bounds = array<i64: 3, 8>}, {transform_indices = @transform_7, window_bounds = array<i64: 2, 32>}, {transform_indices = @transform_8, window_bounds = array<i64: 2, 8>}]} {
    %c0 = arith.constant 0 : index
    %c0_0 = arith.constant 0 : index
    %c0_1 = arith.constant 0 : index
    %0 = vector.load %arg1[%c0, %c0_0, %c0_1] : memref<2x8x32xf32, #tpu.memory_space<vmem>>, vector<2x8x32xf32>
    %c0_2 = arith.constant 0 : index
    %c0_3 = arith.constant 0 : index
    %1 = vector.load %arg2[%c0_2, %c0_3] : memref<2x32xf32, #tpu.memory_space<vmem>>, vector<2x32xf32>
    %c0_4 = arith.constant 0 : index
    %c0_5 = arith.constant 0 : index
    %2 = vector.load %arg3[%c0_4, %c0_5] : memref<2x32xf32, #tpu.memory_space<vmem>>, vector<2x32xf32>
    %3 = vector.shape_cast %0 : vector<2x8x32xf32> to vector<16x32xf32>
    %c0_6 = arith.constant 0 : index
    %c0_7 = arith.constant 0 : index
    %4 = vector.load %arg4[%c0_6, %c0_7] : memref<32x64xf32, #tpu.memory_space<vmem>>, vector<32x64xf32>
    %cst = arith.constant dense<0.000000e+00> : vector<16x64xf32>
    %5 = tpu.matmul %3, %4, %cst {dimension_numbers = #tpu.dot_dimension_numbers<[1], [0], [0], [1], [0, 0, 1, 1], [], []>} : vector<16x32xf32>, vector<32x64xf32>, vector<16x64xf32> -> vector<16x64xf32>
    %6 = vector.extract_strided_slice %5 {offsets = [0, 0], sizes = [16, 32], strides = [1, 1]} : vector<16x64xf32> to vector<16x32xf32>
    %7 = vector.shape_cast %6 : vector<16x32xf32> to vector<2x8x32xf32>
    %8 = vector.extract_strided_slice %5 {offsets = [0, 32], sizes = [16, 32], strides = [1, 1]} : vector<16x64xf32> to vector<16x32xf32>
    %9 = vector.shape_cast %8 : vector<16x32xf32> to vector<2x8x32xf32>
    %c0_8 = arith.constant 0 : index
    %c0_9 = arith.constant 0 : index
    %10 = vector.load %arg5[%c0_8, %c0_9] : memref<32x32xf32, #tpu.memory_space<vmem>>, vector<32x32xf32>
    %cst_10 = arith.constant dense<0.000000e+00> : vector<2x32xf32>
    %11 = tpu.matmul %1, %10, %cst_10 {dimension_numbers = #tpu.dot_dimension_numbers<[1], [0], [0], [1], [0, 0, 1, 1], [], []>} : vector<2x32xf32>, vector<32x32xf32>, vector<2x32xf32> -> vector<2x32xf32>
    %cst_11 = arith.constant 0.000000e+00 : f32
    %12 = vector.broadcast %cst_11 : f32 to vector<2x8x32xf32>
    %13 = arith.cmpf one, %7, %12 : vector<2x8x32xf32>
    %14 = arith.extui %13 : vector<2x8x32xi1> to vector<2x8x32xi32>
    %15 = arith.sitofp %14 : vector<2x8x32xi32> to vector<2x8x32xf32>
    %16 = vector.shape_cast %11 : vector<2x32xf32> to vector<2x1x32xf32>
    %17 = vector.shape_cast %2 : vector<2x32xf32> to vector<2x1x32xf32>
    %18 = vector.broadcast %16 : vector<2x1x32xf32> to vector<2x8x32xf32>
    %19 = arith.mulf %18, %15 : vector<2x8x32xf32>
    %20 = vector.broadcast %17 : vector<2x1x32xf32> to vector<2x8x32xf32>
    %21 = arith.mulf %20, %15 : vector<2x8x32xf32>
    %22 = arith.subf %19, %7 : vector<2x8x32xf32>
    %23 = vector.broadcast %16 : vector<2x1x32xf32> to vector<2x8x32xf32>
    %24 = arith.mulf %23, %7 : vector<2x8x32xf32>
    %25 = arith.subf %21, %7 : vector<2x8x32xf32>
    %26 = vector.broadcast %17 : vector<2x1x32xf32> to vector<2x8x32xf32>
    %27 = arith.mulf %26, %7 : vector<2x8x32xf32>
    %28 = tpu.concatenate %22, %24, %25, %27 in 2 : vector<2x8x32xf32>, vector<2x8x32xf32>, vector<2x8x32xf32>, vector<2x8x32xf32> -> vector<2x8x128xf32>
    %c0_12 = arith.constant 0 : index
    %c0_13 = arith.constant 0 : index
    %29 = vector.load %arg7[%c0_12, %c0_13] : memref<3x8xf32, #tpu.memory_space<vmem>>, vector<3x8xf32>
    %30 = vector.shape_cast %28 : vector<2x8x128xf32> to vector<16x128xf32>
    %c0_14 = arith.constant 0 : index
    %c0_15 = arith.constant 0 : index
    %31 = vector.load %arg6[%c0_14, %c0_15] : memref<128x8xf32, #tpu.memory_space<vmem>>, vector<128x8xf32>
    %cst_16 = arith.constant dense<0.000000e+00> : vector<16x8xf32>
    %32 = tpu.matmul %30, %31, %cst_16 {dimension_numbers = #tpu.dot_dimension_numbers<[1], [0], [0], [1], [0, 0, 1, 1], [], []>} : vector<16x128xf32>, vector<128x8xf32>, vector<16x8xf32> -> vector<16x8xf32>
    %33 = vector.extract_strided_slice %29 {offsets = [0, 0], sizes = [1, 8], strides = [1, 1]} : vector<3x8xf32> to vector<1x8xf32>
    %34 = vector.broadcast %33 : vector<1x8xf32> to vector<16x8xf32>
    %35 = arith.addf %32, %34 : vector<16x8xf32>
    %36 = arith.negf %35 : vector<16x8xf32>
    %37 = math.exp %36 : vector<16x8xf32>
    %cst_17 = arith.constant 1.000000e+00 : f32
    %38 = vector.broadcast %cst_17 : f32 to vector<16x8xf32>
    %39 = arith.addf %38, %37 : vector<16x8xf32>
    %40 = arith.divf %38, %39 : vector<16x8xf32>
    %41 = vector.extract_strided_slice %29 {offsets = [1, 0], sizes = [1, 8], strides = [1, 1]} : vector<3x8xf32> to vector<1x8xf32>
    %42 = vector.broadcast %41 : vector<1x8xf32> to vector<16x8xf32>
    %43 = arith.mulf %40, %42 : vector<16x8xf32>
    %cst_18 = arith.constant dense<0.000000e+00> : vector<16xf32>
    %44 = vector.multi_reduction <add>, %43, %cst_18 [1] : vector<16x8xf32> to vector<16xf32>
    %45 = vector.shape_cast %44 : vector<16xf32> to vector<16x1xf32>
    %46 = vector.extract_strided_slice %29 {offsets = [2, 0], sizes = [1, 1], strides = [1, 1]} : vector<3x8xf32> to vector<1x1xf32>
    %47 = vector.broadcast %46 : vector<1x1xf32> to vector<16x1xf32>
    %48 = arith.addf %45, %47 : vector<16x1xf32>
    %49 = arith.negf %48 : vector<16x1xf32>
    %50 = math.exp %49 : vector<16x1xf32>
    %cst_19 = arith.constant 1.000000e+00 : f32
    %51 = vector.broadcast %cst_19 : f32 to vector<16x1xf32>
    %52 = arith.addf %51, %50 : vector<16x1xf32>
    %53 = arith.divf %51, %52 : vector<16x1xf32>
    %54 = vector.shape_cast %53 : vector<16x1xf32> to vector<2x8x1xf32>
    %55 = vector.shape_cast %54 : vector<2x8x1xf32> to vector<2x8xf32>
    %c0_20 = arith.constant 0 : index
    %c0_21 = arith.constant 0 : index
    %56 = vector.load %arg9[%c0_20, %c0_21] : memref<2x8xf32, #tpu.memory_space<vmem>>, vector<2x8xf32>
    tpu.vector_store %arg9[%c0_20, %c0_21], %55 {strides = array<i32>} : memref<2x8xf32, #tpu.memory_space<vmem>>, vector<2x8xf32>,
    %57 = vector.broadcast %54 : vector<2x8x1xf32> to vector<2x8x32xf32>
    %58 = arith.mulf %57, %9 : vector<2x8x32xf32>
    %cst_22 = arith.constant dense<0.000000e+00> : vector<2x32xf32>
    %59 = vector.multi_reduction <add>, %58, %cst_22 [1] : vector<2x8x32xf32> to vector<2x32xf32>
    %c0_23 = arith.constant 0 : index
    %c0_24 = arith.constant 0 : index
    %60 = vector.load %arg8[%c0_23, %c0_24] : memref<2x32xf32, #tpu.memory_space<vmem>>, vector<2x32xf32>
    tpu.vector_store %arg8[%c0_23, %c0_24], %59 {strides = array<i32>} : memref<2x32xf32, #tpu.memory_space<vmem>>, vector<2x32xf32>,
    return
  }
  func.func @transform_0(%arg0: i32) -> (i32, i32, i32) {
    %c0_i32 = arith.constant 0 : i32
    %c0_i32_0 = arith.constant 0 : i32
    %c0_i32_1 = arith.constant 0 : i32
    return %arg0, %c0_i32, %c0_i32_0 : i32, i32, i32
  }
  func.func @transform_1(%arg0: i32) -> (i32, i32) {
    %c0_i32 = arith.constant 0 : i32
    %c0_i32_0 = arith.constant 0 : i32
    return %arg0, %c0_i32 : i32, i32
  }
  func.func @transform_2(%arg0: i32) -> (i32, i32) {
    %c0_i32 = arith.constant 0 : i32
    %c0_i32_0 = arith.constant 0 : i32
    return %arg0, %c0_i32 : i32, i32
  }
  func.func @transform_3(%arg0: i32) -> (i32, i32) {
    %c0_i32 = arith.constant 0 : i32
    %c0_i32_0 = arith.constant 0 : i32
    %c0_i32_1 = arith.constant 0 : i32
    return %c0_i32, %c0_i32_0 : i32, i32
  }
  func.func @transform_4(%arg0: i32) -> (i32, i32) {
    %c0_i32 = arith.constant 0 : i32
    %c0_i32_0 = arith.constant 0 : i32
    %c0_i32_1 = arith.constant 0 : i32
    return %c0_i32, %c0_i32_0 : i32, i32
  }
  func.func @transform_5(%arg0: i32) -> (i32, i32) {
    %c0_i32 = arith.constant 0 : i32
    %c0_i32_0 = arith.constant 0 : i32
    %c0_i32_1 = arith.constant 0 : i32
    return %c0_i32, %c0_i32_0 : i32, i32
  }
  func.func @transform_6(%arg0: i32) -> (i32, i32) {
    %c0_i32 = arith.constant 0 : i32
    %c0_i32_0 = arith.constant 0 : i32
    %c0_i32_1 = arith.constant 0 : i32
    return %c0_i32, %c0_i32_0 : i32, i32
  }
  func.func @transform_7(%arg0: i32) -> (i32, i32) {
    %c0_i32 = arith.constant 0 : i32
    %c0_i32_0 = arith.constant 0 : i32
    return %arg0, %c0_i32 : i32, i32
  }
  func.func @transform_8(%arg0: i32) -> (i32, i32) {
    %c0_i32 = arith.constant 0 : i32
    %c0_i32_0 = arith.constant 0 : i32
    return %arg0, %c0_i32 : i32, i32
  }
}

</mosaic_0001>

<bundles_post_ra>
// kernel: multiattention_forward.1
= control target key start
LH: loop header
LB: loop body
LE: loop exit
PB: predicated region body
PF: predicated region fallthrough
CT: control target
= control target key end

     0   :  { %14 = vsyncpa [#allocation3], 0  ;;  %s653_s0 = inlined_call_operand.vmem [shape: f32[2,8,32], index: 0, kind: input, shape index: {}]   ;;  %s654_s1 = inlined_call_operand.vmem [shape: f32[2,32], index: 1, kind: input, shape index: {}]   ;;  %s655_s2 = inlined_call_operand.vmem [shape: f32[2,32], index: 2, kind: input, shape index: {}]   ;;  %s656_s3 = inlined_call_operand.vmem [shape: f32[32,64], index: 3, kind: input, shape index: {}]   ;;  %s657_s4 = inlined_call_operand.vmem [shape: f32[32,32], index: 4, kind: input, shape index: {}]   ;;  %s658_s5 = inlined_call_operand.vmem [shape: f32[128,8], index: 5, kind: input, shape index: {}]   ;;  %s659_s6 = inlined_call_operand.vmem [shape: f32[3,8], index: 6, kind: input, shape index: {}]   ;;  %s660_s7 = inlined_call_operand.hbm [shape: f32[2,32], index: 7, kind: output, shape index: {0}]   ;;  %s661_s8 = inlined_call_operand.hbm [shape: f32[2,8], index: 8, kind: output, shape index: {1}]  }
   0x1   :  { %v37_v0 = vld [vmem:[%s656_s3 + $0x18] sm:$0xff]  ;;  %v36_v2 = vld [vmem:[%s656_s3 + $0x10] sm:$0xff]  ;;  %v35_v4 = vld [vmem:[%s656_s3 + $0x8] sm:$0xff] }
   0x2   :  { %v71_v1 = vld [vmem:[%s657_s4 + $0x18] sm:$0xff]  ;;  %57 = vmatpush.msra.mxu0 %v37_v0  ;;  %v70_v3 = vld [vmem:[%s657_s4 + $0x10] sm:$0xff]  ;;  %v69_v5 = vld [vmem:[%s657_s4 + $0x8] sm:$0xff] }
   0x3   :  { %87 = vmatpush.msra.mxu1 %v71_v1 }
   0x4   :  { %58 = vmatpush.msra.mxu0 %v36_v2 }
   0x5   :  { %88 = vmatpush.msra.mxu1 %v70_v3 }
   0x6   :  { %15 = vsyncpa [#allocation5], 0  ;;  %v34_v6 = vld [vmem:[%s656_s3] sm:$0xff]  ;;  %59 = vmatpush.msra.mxu0 %v35_v4  ;;  %vm38_vm0 = vcmask 261120   ;;  %v31_v10 = vld [vmem:[%s653_s0 + $0x8] sm:$0xff]  ;;  %v480_v25 = vmov 0.0  }
   0x7   :  { %v68_v7 = vld [vmem:[%s657_s4] sm:$0xff]  ;;  %89 = vmatpush.msra.mxu1 %v69_v5  ;;  %v173_v11 = vld [vmem:[%s658_s5 + $0x78] sm:$0xff]  ;;  %v172_v12 = vld [vmem:[%s658_s5 + $0x70] sm:$0xff]  ;;  %s481_s22 = smov 96   ;;  %s482_s23 = smov 32   ;;  %vm151_vm3 = vcmask 523264  }
   0x8   :  { %v30_v8 = vld [vmem:[%s653_s0] sm:$0xff]  ;;  %60 = vmatpush.msra.mxu0 %v34_v6  ;;  %175 = vmatpush.msra.mxu2 %v173_v11  ;;  %v171_v13 = vld [vmem:[%s658_s5 + $0x68] sm:$0xff]  ;;  %v169_v15 = vld [vmem:[%s658_s5 + $0x58] sm:$0xff]  ;;  %s483_s24 = smov 64   ;;  %vm154_vm4 = vcmask 785408   ;;  %vm239_vm12 = vcmask 64512  }
   0x9   :  { %v32_v9 = vld [vmem:[%s654_s1] sm:$0x3]  ;;  %90 = vmatpush.msra.mxu1 %v68_v7  ;;  %363 = vmatmul.msk.f32.vlgmr.msra.gmra.mxu0 %vm38_vm0, %v30_v8  ;;  %v168_v16 = vld [vmem:[%s658_s5 + $0x50] sm:$0xff]  ;;  %v167_v17 = vld [vmem:[%s658_s5 + $0x48] sm:$0xff]  ;;  %s349_s15 = sshll.u32 %s661_s8, 4  ;;  %s486_s16 = smov [#allocation2]   ;;  %s350_s15 = int_to_ptr.hbm [resolvable:$true] %s349_s15 }
   0xa   :  { %365 = vmatmul.msk.f32.vlgmr.msra.gmra.mxu1 %vm38_vm0, %v32_v9  ;;  %372 = vmatpush.msra.mxu3 %v173_v11  ;;  %v170_v14 = vld [vmem:[%s658_s5 + $0x60] sm:$0xff]  ;;  %v165_v28 = vld [vmem:[%s658_s5 + $0x38] sm:$0xff]  ;;  %v164_v32 = vld [vmem:[%s658_s5 + $0x30] sm:$0xff]  ;;  %s336_s17 = sshll.u32 %s486_s16, 4  ;;  %s338_s8 = sshll.u32 %s660_s7, 4  ;;  %s337_s17 = int_to_ptr.vmem [resolvable:$true] %s336_s17  ;;  %s339_s8 = int_to_ptr.hbm [resolvable:$true] %s338_s8 }
   0xb   :  { %176 = vmatpush.msra.mxu2 %v172_v12  ;;  %v33_v19 = vld [vmem:[%s655_s2] sm:$0x3]  ;;  %v163_v47 = vld [vmem:[%s658_s5 + $0x28] sm:$0xff]  ;;  %v161_v49 = vld [vmem:[%s658_s5 + $0x18] sm:$0xff] }
   0xc   :  { %373 = vmatpush.msra.mxu3 %v172_v12  ;;  %v104_v23 = vrot.slane %v33_v19, 1  ;;  %v166_v24 = vld [vmem:[%s658_s5 + $0x40] sm:$0xff]  ;;  %v111_v29 = vperm.slane %v33_v19, 0  ;;  %v160_v50 = vld [vmem:[%s658_s5 + $0x10] sm:$0xff]  ;;  %v159_v51 = vld [vmem:[%s658_s5 + $0x8] sm:$0xff] }
   0xd   :  { %177 = vmatpush.msra.mxu2 %v171_v13  ;;  %v162_v48 = vld [vmem:[%s658_s5 + $0x20] sm:$0xff] }
   0xe   :  { %374 = vmatpush.msra.mxu3 %v171_v13  ;;  %v112_v31 = vperm.slane %v104_v23, 0  ;;  %v158_v52 = vld [vmem:[%s658_s5] sm:$0xff] }
   0xf   :  { %178 = vmatpush.msra.mxu2 %v170_v14  ;;  %v157_v6 = vld [vmem:[%s659_s6] sm:$0x7]  ;;  %s485_s6 = smov [#allocation4]  }
  0x10   :  { %375 = vmatpush.msra.mxu3 %v170_v14  ;;  %v174_v7 = vperm.slane %v157_v6, 0  ;;  %s347_s12 = sshll.u32 %s485_s6, 4  ;;  %s348_s12 = int_to_ptr.vmem [resolvable:$true] %s347_s12 }
  0x11   :  { %364 = vmatmul.msk.f32.gmra.mxu0 %vm38_vm0, %v31_v10  ;;  %179 = vmatpush.msra.mxu2 %v169_v15 }
  0x12   :  { %376 = vmatpush.msra.mxu3 %v169_v15 }
  0x13   :  { %180 = vmatpush.msra.mxu2 %v168_v16 }
  0x14   :  { %377 = vmatpush.msra.mxu3 %v168_v16 }
  0x15   :  { %181 = vmatpush.msra.mxu2 %v167_v17 }
  0x16   :  { %378 = vmatpush.msra.mxu3 %v167_v17 }
  0x17   :  { %182 = vmatpush.msra.mxu2 %v166_v24 }
  0x18   :  { %379 = vmatpush.msra.mxu3 %v166_v24 }
  0x19   :  { %183 = vmatpush.msra.mxu2 %v165_v28 }
  0x1a   :  { %380 = vmatpush.msra.mxu3 %v165_v28 }
  0x1b   :  { %184 = vmatpush.msra.mxu2 %v164_v32 }
  0x1c   :  { %381 = vmatpush.msra.mxu3 %v164_v32  ;;  %v236_v32 = vperm.slane %v157_v6, 1 }
  0x1d   :  { %185 = vmatpush.msra.mxu2 %v163_v47 }
  0x1e   :  { %382 = vmatpush.msra.mxu3 %v163_v47 }
  0x1f   :  { %186 = vmatpush.msra.mxu2 %v162_v48 }
  0x20   :  { %383 = vmatpush.msra.mxu3 %v162_v48 }
  0x21   :  { %187 = vmatpush.msra.mxu2 %v161_v49 }
  0x22   :  { %384 = vmatpush.msra.mxu3 %v161_v49 }
  0x23   :  { %188 = vmatpush.msra.mxu2 %v160_v50 }
  0x24   :  { %385 = vmatpush.msra.mxu3 %v160_v50 }
  0x25   :  { %189 = vmatpush.msra.mxu2 %v159_v51 }
  0x26   :  { %386 = vmatpush.msra.mxu3 %v159_v51 }
  0x27   :  { %190 = vmatpush.msra.mxu2 %v158_v52 }
  0x28   :  { %387 = vmatpush.msra.mxu3 %v158_v52 }
  0x86   :  { %v589_v18 = vpop.f32.mrf.mxu0 }
  0x87   :  { %v92_v20 = vpop.f32.mrf.mxu1  ;;  %vm95_vm1 = vcmp.ne.f32.partialorder %v589_v18, 0.0  ;;  %v123_v34 = vmul.f32 %v111_v29, %v589_v18 }
  0x88   :  { %v102_v21 = vrot.slane %v92_v20, 1  ;;  %v105_v22 = vperm.slane %v92_v20, 0  ;;  %v366_v26 = vsel %vm95_vm1, 1.0, %v480_v25 }
  0x89   :  { %v115_v43 = vmul.f32 %v366_v26, %v111_v29 }
  0x8a   :  { %v598_v27 = vmul.f32 %v366_v26, %v105_v22  ;;  %v106_v30 = vperm.slane %v102_v21, 0  ;;  %v119_v35 = vmul.f32 %v105_v22, %v589_v18 }
  0x8b   :  { %v121_v45 = vsub.f32 %v115_v43, %v589_v18 }
  0x8c   :  { %v117_v57 = vsub.f32 %v598_v27, %v589_v18 }
  0x8e   :  { %v606_v33 = vpop.f32.mrf.mxu0 }
  0x8f   :  { %vm96_vm2 = vcmp.ne.f32.partialorder %v606_v33, 0.0  ;;  %v124_v36 = vmul.f32 %v112_v31, %v606_v33  ;;  %v120_v37 = vmul.f32 %v106_v30, %v606_v33 }
  0x90   :  { %v367_v38 = vsel %vm96_vm2, 1.0, %v480_v25 }
  0x91   :  { %v110_v39 = vmul.f32 %v367_v38, %v106_v30  ;;  %v405_v40 = vpack.i.bf16 %v124_v36, %v123_v34  ;;  %v116_v41 = vmul.f32 %v367_v38, %v112_v31  ;;  %v395_v42 = vpack.i.bf16 %v120_v37, %v119_v35 }
  0x93   :  { %406 = vrot.lane.b32.xlu1 %v405_v40, %s481_s22  ;;  %396 = vrot.lane.b32.xlu0 %v395_v42, %s482_s23  ;;  %v122_v44 = vsub.f32 %v116_v41, %v606_v33  ;;  %v118_v58 = vsub.f32 %v110_v39, %v606_v33 }
  0x95   :  { %v400_v46 = vpack.i.bf16 %v122_v44, %v121_v45  ;;  %v484_v45 = vmov 0  }
  0x96   :  { %411 = vset.pattern.permute.xlu0 %v484_v45  ;;  %410 = vset.pattern.permute.xlu2 %v484_v45 }
  0x9b   :  { %401 = vrot.lane.b32.xlu0 %v400_v46, %s483_s24  ;;  %v246_v46 = vperm.slane %v157_v6, 2 }
 0x105   :  { %v397_v53 = vpop.permute.xlu0 %396  ;;  %v407_v56 = vpop.permute.xlu1 %406 }
 0x106   :  { %v399_v54 = vunpack.i.h.bf16 %v397_v53  ;;  %v398_v55 = vunpack.i.l.bf16 %v397_v53  ;;  %v409_v62 = vunpack.i.h.bf16 %v407_v56  ;;  %v408_v63 = vunpack.i.l.bf16 %v407_v56 }
 0x108   :  { %v149_v0 = vsel %vm38_vm0, %v117_v57, %v398_v55  ;;  %v150_v1 = vsel %vm38_vm0, %v118_v58, %v399_v54 }
 0x10d   :  { %v402_v59 = vpop.permute.xlu0 %401 }
 0x10e   :  { %v404_v60 = vunpack.i.h.bf16 %v402_v59  ;;  %v403_v61 = vunpack.i.l.bf16 %v402_v59 }
 0x110   :  { %v152_v2 = vsel %vm151_vm3, %v149_v0, %v403_v61  ;;  %v153_v3 = vsel %vm151_vm3, %v150_v1, %v404_v60 }
 0x111   :  { %v155_v4 = vsel %vm154_vm4, %v152_v2, %v408_v63  ;;  %v156_v5 = vsel %vm154_vm4, %v153_v3, %v409_v62 }
 0x112   :  { %191 = vmatmul.f32.vlgmr.msra.gmra.mxu2 %v155_v4  ;;  %194 = vmatmul.f32.vlgmr.msra.gmra.mxu3 %v156_v5 }
 0x195   :  { %v192_v8 = vpop.f32.mrf.mxu2  ;;  %v195_v9 = vpop.f32.mrf.mxu3 }
 0x196   :  { %v193_v10 = vadd.f32 %v192_v8, %v174_v7  ;;  %v196_v11 = vadd.f32 %v195_v9, %v174_v7 }
 0x198   :  { %v368_v12 = vmul.f32 -1.442695, %v193_v10  ;;  %v369_v13 = vmul.f32 -1.442695, %v196_v11 }
 0x19a   :  { %412 = vpow2.f32 %v368_v12 }
 0x19b   :  { %414 = vpow2.f32 %v369_v13 }
 0x1a0   :  { %v413_v14 = vpop.eup %412 }
 0x1a1   :  { %v415_v15 = vpop.eup %414  ;;  %v204_v16 = vadd.f32 1.0, %v413_v14 }
 0x1a2   :  { %v205_v17 = vadd.f32 1.0, %v415_v15 }
 0x1a3   :  { %416 = vrcp.f32 %v204_v16  ;;  %v217_v24 = vand.u32 2147483648, %v204_v16  ;;  %v215_v27 = vand.u32 2147483647, %v204_v16  ;;  %vm211_vm7 = vweird.f32 %v204_v16 }
 0x1a4   :  { %418 = vrcp.f32 %v205_v17  ;;  %v232_v28 = vand.u32 2147483648, %v205_v17  ;;  %v230_v30 = vand.u32 2147483647, %v205_v17  ;;  %vm226_vm9 = vweird.f32 %v205_v17 }
 0x1a5   :  { %v218_v34 = vor.u32 1.1754944e-38, %v217_v24  ;;  %vm216_vm10 = vcmp.eq.f32.partialorder %v215_v27, 8.507059e+37 }
 0x1a6   :  { %v233_v37 = vor.u32 1.1754944e-38, %v232_v28  ;;  %vm231_vm13 = vcmp.eq.f32.partialorder %v230_v30, 8.507059e+37 }
 0x1a9   :  { %v417_v19 = vpop.eup %416 }
 0x1aa   :  { %v419_v20 = vpop.eup %418  ;;  %v207_v21 = vmul.f32 %v417_v19, %v204_v16  ;;  %vm212_vm5 = vweird.f32 %v417_v19  ;;  %v295_v16 = vlaneseq }
 0x1ab   :  { %v222_v22 = vmul.f32 %v419_v20, %v205_v17  ;;  %vm227_vm6 = vweird.f32 %v419_v20  ;;  %vm213_vm8 = vmor %vm211_vm7, %vm212_vm5  ;;  %vm299_vm7 = vcmask 1041409  }
 0x1ac   :  { %v208_v23 = vsub.f32 1.0, %v207_v21  ;;  %vm228_vm11 = vmor %vm226_vm9, %vm227_vm6  ;;  %vm308_vm6 = vcmask 523520   ;;  %vm329_vm9 = vcmask 254976  }
 0x1ad   :  { %v223_v25 = vsub.f32 1.0, %v222_v22 }
 0x1ae   :  { %v209_v26 = vmul.f32 %v417_v19, %v208_v23 }
 0x1af   :  { %v224_v29 = vmul.f32 %v419_v20, %v223_v25 }
 0x1b0   :  { %v210_v31 = vadd.f32 %v417_v19, %v209_v26 }
 0x1b1   :  { %v225_v35 = vadd.f32 %v419_v20, %v224_v29 }
 0x1b2   :  { %v214_v36 = vsel %vm213_vm8, %v417_v19, %v210_v31  ;;  %v296_v19 = vand.u32 127, %v295_v16  ;;  %vm302_vm8 = vcmask 58368  }
 0x1b3   :  { %v219_v38 = vsel %vm216_vm10, %v218_v34, %v214_v36  ;;  %v229_v39 = vsel %vm228_vm11, %v419_v20, %v225_v35 }
 0x1b4   :  { %v237_v40 = vmul.f32 %v236_v32, %v219_v38  ;;  %v234_v41 = vsel %vm231_vm13, %v233_v37, %v229_v39 }
 0x1b5   :  { %v238_v42 = vmul.f32 %v236_v32, %v234_v41 }
 0x1b6   :  { %v240_v43 = vsel %vm239_vm12, %v237_v40, 0.0 }
 0x1b7   :  { %241 = vadd.xlane.f32.xlu1 %v240_v43  ;;  %v243_v44 = vsel %vm239_vm12, %v238_v42, 0.0 }
 0x1b8   :  { %244 = vadd.xlane.f32.xlu2 %v243_v44 }
 0x22a   :  { %v242_v47 = vpop.xlane.xlu1 %241 }
 0x22b   :  { %v247_v48 = vadd.f32 %v246_v46, %v242_v47  ;;  %v245_v49 = vpop.xlane.xlu2 %244 }
 0x22c   :  { %v248_v50 = vadd.f32 %v246_v46, %v245_v49 }
 0x22d   :  { %v370_v51 = vmul.f32 -1.442695, %v247_v48 }
 0x22e   :  { %v371_v52 = vmul.f32 -1.442695, %v248_v50 }
 0x22f   :  { %420 = vpow2.f32 %v370_v51 }
 0x230   :  { %422 = vpow2.f32 %v371_v52 }
 0x235   :  { %v421_v53 = vpop.eup %420 }
 0x236   :  { %v423_v54 = vpop.eup %422  ;;  %v255_v55 = vadd.f32 1.0, %v421_v53 }
 0x237   :  { %v256_v56 = vadd.f32 1.0, %v423_v54 }
 0x238   :  { %424 = vrcp.f32 %v255_v55  ;;  %v268_v62 = vand.u32 2147483648, %v255_v55  ;;  %v266_v1 = vand.u32 2147483647, %v255_v55  ;;  %vm262_vm0 = vweird.f32 %v255_v55 }
 0x239   :  { %426 = vrcp.f32 %v256_v56  ;;  %v283_v2 = vand.u32 2147483648, %v256_v56  ;;  %v281_v4 = vand.u32 2147483647, %v256_v56  ;;  %vm277_vm2 = vweird.f32 %v256_v56 }
 0x23a   :  { %v269_v6 = vor.u32 1.1754944e-38, %v268_v62  ;;  %vm267_vm3 = vcmp.eq.f32.partialorder %v266_v1, 8.507059e+37 }
 0x23b   :  { %v284_v9 = vor.u32 1.1754944e-38, %v283_v2  ;;  %vm282_vm5 = vcmp.eq.f32.partialorder %v281_v4, 8.507059e+37 }
 0x23e   :  { %v425_v57 = vpop.eup %424 }
 0x23f   :  { %v427_v58 = vpop.eup %426  ;;  %v258_v59 = vmul.f32 %v425_v57, %v255_v55  ;;  %vm263_vm14 = vweird.f32 %v425_v57 }
 0x240   :  { %v273_v60 = vmul.f32 %v427_v58, %v256_v56  ;;  %vm278_vm15 = vweird.f32 %v427_v58  ;;  %vm264_vm1 = vmor %vm262_vm0, %vm263_vm14 }
 0x241   :  { %v259_v61 = vsub.f32 1.0, %v258_v59  ;;  %vm279_vm4 = vmor %vm277_vm2, %vm278_vm15 }
 0x242   :  { %v274_v63 = vsub.f32 1.0, %v273_v60 }
 0x243   :  { %v260_v0 = vmul.f32 %v425_v57, %v259_v61 }
 0x244   :  { %v275_v3 = vmul.f32 %v427_v58, %v274_v63 }
 0x245   :  { %v261_v5 = vadd.f32 %v425_v57, %v260_v0 }
 0x246   :  { %v276_v7 = vadd.f32 %v427_v58, %v275_v3 }
 0x247   :  { %v265_v8 = vsel %vm264_vm1, %v425_v57, %v261_v5 }
 0x248   :  { %v270_v10 = vsel %vm267_vm3, %v269_v6, %v265_v8  ;;  %v280_v11 = vsel %vm279_vm4, %v427_v58, %v276_v7 }
 0x249   :  { %290 = vperm.xlu2 %410, %v270_v10   ;;  %v285_v12 = vsel %vm282_vm5, %v284_v9, %v280_v11 }
 0x24a   :  { %293 = vperm.xlu0 %411, %v285_v12  }
 0x2a3   :  { %v291_v13 = vpop.permute.xlu2 %290 }
 0x2a4   :  { %v306_v14 = vmul.f32 %v291_v13, %v589_v18  ;;  %v297_v22 = vperm.slane %v291_v13, %v296_v19 }
 0x2a6   :  { %v309_v15 = vsel %vm308_vm6, %v306_v14, 0.0 }
 0x2a7   :  { %v310_v17 = vrot.slane %v309_v15, 4 }
 0x2a9   :  { %v311_v20 = vadd.f32 %v310_v17, %v309_v15 }
 0x2ab   :  { %v312_v25 = vrot.slane %v311_v20, 2 }
 0x2ad   :  { %v313_v18 = vadd.f32 %v312_v25, %v311_v20 }
 0x2bc   :  { %v294_v21 = vpop.permute.xlu0 %293 }
 0x2bd   :  { %v298_v23 = vperm.slane %v294_v21, %v296_v19  ;;  %v307_v24 = vmul.f32 %v294_v21, %v606_v33  ;;  %v314_v33 = vrot.slane %v313_v18, 1 }
 0x2bf   :  { %v316_v26 = vsel %vm308_vm6, %v307_v24, 0.0  ;;  %v300_v27 = vsel %vm299_vm7, %v298_v23, %v297_v22  ;;  %v315_v34 = vadd.f32 %v314_v33, %v313_v18 }
 0x2c0   :  { %v317_v28 = vrot.slane %v316_v26, 4  ;;  %303 = vst.msk [vmem:[#allocation4] sm:$0x3] %vm302_vm8, %v300_v27 }
 0x2c1   :  { %352 = dma.vmem_to_hbm [thread:$0]  %s348_s12, 32, %s350_s15, [#allocation5]  }
 0x2c2   :  { %v318_v29 = vadd.f32 %v317_v28, %v316_v26 }
 0x2c4   :  { %v319_v30 = vrot.slane %v318_v29, 2 }
 0x2c6   :  { %v320_v31 = vadd.f32 %v319_v30, %v318_v29 }
 0x2c8   :  { %v321_v32 = vrot.slane %v320_v31, 1 }
 0x2ca   :  { %v322_v35 = vadd.f32 %v321_v32, %v320_v31 }
 0x2cc   :  { %v325_v36 = vsel %vm299_vm7, %v322_v35, %v315_v34 }
 0x2cd   :  { %326 = vrot.lane.b32.xlu0 %v325_v36, %s481_s22 }
 0x33f   :  { %v327_v37 = vpop.permute.xlu0 %326 }
 0x340   :  { %330 = vst.msk [vmem:[#allocation2] sm:$0x3] %vm329_vm9, %v327_v37 }
 0x341   :  { %341 = dma.vmem_to_hbm [thread:$0]  %s337_s17, 32, %s339_s8, [#allocation3]  }
 0x342   :  { %476 = dma.done.wait [#allocation3], 32  }
 0x343   :  { %477 = vsyncadd [#allocation3], 4294967264 }
 0x344   :  { %478 = dma.done.wait [#allocation5], 32  }
 0x345   :  { %479 = vsyncadd [#allocation5], 4294967264 }
 0x346   :  { %361 = vsyncpa [#allocation3], 1 }
 0x347   :  { %362 = vsyncpa [#allocation5], 1 }

</bundles_post_ra>
